<compile_context>
chip_gen: v7x
topology: tpu7x:2x2x1
jax: 0.10.0
libtpu: 0.0.40
codegen_flags: <defaults>
</compile_context>

<pallas_src>
import functools
import math

import numpy as np

import jax
import jax.numpy as jnp
from jax import lax
from jax.experimental import pallas as pl
from jax.experimental.pallas import tpu as pltpu


# ---------------------------------------------------------------------------
# Fused XCA kernel: one grid step per batch element.
# ---------------------------------------------------------------------------
def _xca_fused_kernel(*refs, has_qkv_bias):
    if has_qkv_bias:
        (x_ref, qkv_w_ref, qkv_b_ref, proj_w_ref, proj_b_ref,
         scale_ref, mask_ref, o_ref) = refs
    else:
        (x_ref, qkv_w_ref, proj_w_ref, proj_b_ref,
         scale_ref, mask_ref, o_ref) = refs
        qkv_b_ref = None

    C = o_ref.shape[-1]
    x = x_ref[0]                                           # (N, C) bf16

    # qkv Linear: (N, C) @ (C, 3C) -> (N, 3C) f32 accumulation on the MXU.
    qkv = jnp.dot(x, qkv_w_ref[...], preferred_element_type=jnp.float32)
    if qkv_b_ref is not None:
        qkv = qkv + qkv_b_ref[...]

    q = qkv[:, 0:C]
    k = qkv[:, C:2 * C]
    v = qkv[:, 2 * C:3 * C]

    # F.normalize(q, dim=-1) in the (B, h, hd, N) layout normalizes over N,
    # i.e. over the token axis of each channel column here (eps = 1e-12).
    qn = q / jnp.maximum(jnp.sqrt(jnp.sum(q * q, axis=0, keepdims=True)), 1e-12)
    kn = k / jnp.maximum(jnp.sqrt(jnp.sum(k * k, axis=0, keepdims=True)), 1e-12)

    # Cross-covariance gram over tokens: (C, C).  The per-head (hd, hd)
    # attention matrices are its diagonal blocks; the additive mask removes
    # everything off-block before the softmax.
    g = lax.dot_general(qn.astype(jnp.bfloat16), kn.astype(jnp.bfloat16),
                        dimension_numbers=(((0,), (0,)), ((), ())),
                        preferred_element_type=jnp.float32)
    s = g * scale_ref[...] + mask_ref[...]
    m = jnp.max(s, axis=-1, keepdims=True)
    p = jnp.exp(s - m)
    # Row sums are >= 1 (the max term contributes exp(0)); EUP reciprocal.
    attn = p * pl.reciprocal(jnp.sum(p, axis=-1, keepdims=True), approx=True)

    # out[n, d] = sum_e attn[d, e] * v[n, e]   (block-diagonal => per-head)
    out = lax.dot_general(v.astype(jnp.bfloat16), attn.astype(jnp.bfloat16),
                          dimension_numbers=(((1,), (1,)), ((), ())),
                          preferred_element_type=jnp.float32)        # (N, C)

    # proj Linear: (N, C) @ (C, C) + bias.
    y = jnp.dot(out.astype(jnp.bfloat16), proj_w_ref[...],
                preferred_element_type=jnp.float32) + proj_b_ref[...]
    o_ref[0] = y.astype(o_ref.dtype)


def xca_forward(x, p, num_heads=8):
    """XCA forward matching the PyTorch module (dropouts are identity at p=0).

    x: (B, N, C) float32.  Params in `p`: qkv_w (3C, C), optional qkv_b (3C,),
    proj_w (C, C), proj_b (C,), temperature (heads, 1, 1).
    """
    B, N, C = x.shape
    hd = C // num_heads

    # Per-head temperature broadcast + block-diagonal additive mask (tiny
    # (C, C) constants, built once per call outside the kernel).
    head_id = jnp.arange(C) // hd
    same_head = head_id[:, None] == head_id[None, :]
    temp_row = p["temperature"].reshape(num_heads)[head_id]          # (C,)
    scale_mat = jnp.broadcast_to(temp_row[:, None], (C, C)).astype(jnp.float32)
    mask_mat = jnp.where(same_head, 0.0, -1e30).astype(jnp.float32)

    # Weights in (in, out) layout, bf16 for the MXU; biases stay f32.
    qkv_w_t = p["qkv_w"].T.astype(jnp.bfloat16)                      # (C, 3C)
    proj_w_t = p["proj_w"].T.astype(jnp.bfloat16)                    # (C, C)
    proj_b = p["proj_b"].astype(jnp.float32).reshape(1, C)
    x_bf = x.astype(jnp.bfloat16)

    has_qkv_bias = p.get("qkv_b") is not None

    args = [x_bf, qkv_w_t]
    in_specs = [
        pl.BlockSpec((1, N, C), lambda b: (b, 0, 0)),
        pl.BlockSpec((C, 3 * C), lambda b: (0, 0)),
    ]
    if has_qkv_bias:
        args.append(p["qkv_b"].astype(jnp.float32).reshape(1, 3 * C))
        in_specs.append(pl.BlockSpec((1, 3 * C), lambda b: (0, 0)))
    args += [proj_w_t, proj_b, scale_mat, mask_mat]
    in_specs += [
        pl.BlockSpec((C, C), lambda b: (0, 0)),
        pl.BlockSpec((1, C), lambda b: (0, 0)),
        pl.BlockSpec((C, C), lambda b: (0, 0)),
        pl.BlockSpec((C, C), lambda b: (0, 0)),
    ]

    kernel = functools.partial(_xca_fused_kernel, has_qkv_bias=has_qkv_bias)

    # TODO(synk): for very long sequences (N * 3C too big for VMEM) tile N and
    # carry the per-channel sum-of-squares / (C, C) gram across token blocks.
    return pl.pallas_call(
        kernel,
        out_shape=jax.ShapeDtypeStruct((B, N, C), jnp.float32),
        grid_spec=pltpu.PrefetchScalarGridSpec(
            num_scalar_prefetch=0,
            grid=(B,),
            in_specs=in_specs,
            out_specs=pl.BlockSpec((1, N, C), lambda b: (b, 0, 0)),
        ),
        compiler_params=pltpu.CompilerParams(
            dimension_semantics=("parallel",)),
    )(*args)


# ---------------------------------------------------------------------------
# Pure-JAX reference mirroring the PyTorch forward (for self-check).
# ---------------------------------------------------------------------------
def xca_reference(x, p, num_heads=8):
    B, N, C = x.shape
    hd = C // num_heads
    qkv = x @ p["qkv_w"].T
    if p.get("qkv_b") is not None:
        qkv = qkv + p["qkv_b"]
    qkv = qkv.reshape(B, N, 3, num_heads, hd).transpose(2, 0, 3, 1, 4)
    q, k, v = qkv[0], qkv[1], qkv[2]                 # (B, h, N, hd)
    q = jnp.swapaxes(q, -2, -1)                      # (B, h, hd, N)
    k = jnp.swapaxes(k, -2, -1)
    v = jnp.swapaxes(v, -2, -1)
    q = q / jnp.maximum(jnp.sqrt(jnp.sum(q * q, -1, keepdims=True)), 1e-12)
    k = k / jnp.maximum(jnp.sqrt(jnp.sum(k * k, -1, keepdims=True)), 1e-12)
    attn = jnp.einsum("bhdn,bhen->bhde", q, k) * p["temperature"]
    attn = jax.nn.softmax(attn, axis=-1)
    out = jnp.einsum("bhde,bhen->bhdn", attn, v)
    out = out.transpose(0, 3, 1, 2).reshape(B, N, C)
    return out @ p["proj_w"].T + p["proj_b"]


# ---------------------------------------------------------------------------
if __name__ == "__main__":
    # Small shapes consistent with XCA use in CT_UNet's LGFI blocks:
    # dim=64, 8 heads (head_dim=8), N = 8x8 tokens, batch 2.
    B, N, C, HEADS = 2, 64, 64, 8

    key = jax.random.PRNGKey(0)
    k1, k2, k3, k4 = jax.random.split(key, 4)
    x = jax.random.normal(k1, (B, N, C), jnp.float32)
    params = {
        "qkv_w": jax.random.normal(k2, (3 * C, C), jnp.float32) / math.sqrt(C),
        "qkv_b": None,                                    # qkv_bias=False
        "proj_w": jax.random.normal(k3, (C, C), jnp.float32) / math.sqrt(C),
        "proj_b": 0.01 * jax.random.normal(k4, (C,), jnp.float32),
        # non-trivial per-head temperature so the scale path is exercised
        "temperature": jnp.linspace(0.5, 1.5, HEADS,
                                    dtype=jnp.float32).reshape(HEADS, 1, 1),
    }

    fwd = jax.jit(functools.partial(xca_forward, num_heads=HEADS))
    out = jax.block_until_ready(fwd(x, params))

    assert out.shape == (B, N, C), out.shape
    assert bool(jnp.all(jnp.isfinite(out)))

    ref = jax.block_until_ready(xca_reference(x, params, num_heads=HEADS))
    np.testing.assert_allclose(np.asarray(out), np.asarray(ref),
                               rtol=5e-2, atol=5e-2)

    print("KERNEL_OK")
</pallas_src>

<mosaic_0001>
module attributes {stable_mosaic.version = 11 : i64} {
  func.func @_xca_fused_kernel(%arg0: i32, %arg1: memref<1x64x64xbf16, #tpu.memory_space<vmem>>, %arg2: memref<64x192xbf16, #tpu.memory_space<vmem>>, %arg3: memref<64x64xbf16, #tpu.memory_space<vmem>>, %arg4: memref<1x64xf32, #tpu.memory_space<vmem>>, %arg5: memref<64x64xf32, #tpu.memory_space<vmem>>, %arg6: memref<64x64xf32, #tpu.memory_space<vmem>>, %arg7: memref<1x64x64xf32, #tpu.memory_space<vmem>>) attributes {dimension_semantics = [#tpu.dimension_semantics<parallel>], iteration_bounds = array<i64: 2>, scalar_prefetch = 0 : i64, scratch_operands = 0 : i64, tpu.core_type = #tpu.core_type<tc>, window_params = [{transform_indices = @transform_0, window_bounds = array<i64: 1, 64, 64>}, {pipeline_mode = #tpu.pipeline_mode<synchronous>, transform_indices = @transform_1, window_bounds = array<i64: 64, 192>}, {pipeline_mode = #tpu.pipeline_mode<synchronous>, transform_indices = @transform_2, window_bounds = array<i64: 64, 64>}, {pipeline_mode = #tpu.pipeline_mode<synchronous>, transform_indices = @transform_3, window_bounds = array<i64: 1, 64>}, {pipeline_mode = #tpu.pipeline_mode<synchronous>, transform_indices = @transform_4, window_bounds = array<i64: 64, 64>}, {pipeline_mode = #tpu.pipeline_mode<synchronous>, transform_indices = @transform_5, window_bounds = array<i64: 64, 64>}, {transform_indices = @transform_6, window_bounds = array<i64: 1, 64, 64>}]} {
    %c0 = arith.constant 0 : index
    %c0_0 = arith.constant 0 : index
    %c0_1 = arith.constant 0 : index
    %0 = vector.load %arg1[%c0, %c0_0, %c0_1] : memref<1x64x64xbf16, #tpu.memory_space<vmem>>, vector<1x64x64xbf16>
    %1 = vector.shape_cast %0 : vector<1x64x64xbf16> to vector<64x64xbf16>
    %c0_2 = arith.constant 0 : index
    %c0_3 = arith.constant 0 : index
    %2 = vector.load %arg2[%c0_2, %c0_3] : memref<64x192xbf16, #tpu.memory_space<vmem>>, vector<64x192xbf16>
    %cst = arith.constant dense<0.000000e+00> : vector<64x192xf32>
    %3 = tpu.matmul %1, %2, %cst {dimension_numbers = #tpu.dot_dimension_numbers<[1], [0], [0], [1], [0, 0, 1, 1], [], []>} : vector<64x64xbf16>, vector<64x192xbf16>, vector<64x192xf32> -> vector<64x192xf32>
    %4 = vector.extract_strided_slice %3 {offsets = [0, 0], sizes = [64, 64], strides = [1, 1]} : vector<64x192xf32> to vector<64x64xf32>
    %5 = vector.extract_strided_slice %3 {offsets = [0, 64], sizes = [64, 64], strides = [1, 1]} : vector<64x192xf32> to vector<64x64xf32>
    %6 = vector.extract_strided_slice %3 {offsets = [0, 128], sizes = [64, 64], strides = [1, 1]} : vector<64x192xf32> to vector<64x64xf32>
    %7 = arith.mulf %4, %4 : vector<64x64xf32>
    %cst_4 = arith.constant dense<0.000000e+00> : vector<64xf32>
    %8 = vector.multi_reduction <add>, %7, %cst_4 [0] : vector<64x64xf32> to vector<64xf32>
    %9 = vector.shape_cast %8 : vector<64xf32> to vector<1x64xf32>
    %10 = math.sqrt %9 : vector<1x64xf32>
    %cst_5 = arith.constant 9.99999996E-13 : f32
    %11 = vector.broadcast %cst_5 : f32 to vector<1x64xf32>
    %12 = arith.maximumf %10, %11 : vector<1x64xf32>
    %13 = vector.broadcast %12 : vector<1x64xf32> to vector<64x64xf32>
    %14 = arith.divf %4, %13 : vector<64x64xf32>
    %15 = arith.mulf %5, %5 : vector<64x64xf32>
    %cst_6 = arith.constant dense<0.000000e+00> : vector<64xf32>
    %16 = vector.multi_reduction <add>, %15, %cst_6 [0] : vector<64x64xf32> to vector<64xf32>
    %17 = vector.shape_cast %16 : vector<64xf32> to vector<1x64xf32>
    %18 = math.sqrt %17 : vector<1x64xf32>
    %cst_7 = arith.constant 9.99999996E-13 : f32
    %19 = vector.broadcast %cst_7 : f32 to vector<1x64xf32>
    %20 = arith.maximumf %18, %19 : vector<1x64xf32>
    %21 = vector.broadcast %20 : vector<1x64xf32> to vector<64x64xf32>
    %22 = arith.divf %5, %21 : vector<64x64xf32>
    %23 = arith.truncf %14 : vector<64x64xf32> to vector<64x64xbf16>
    %24 = arith.truncf %22 : vector<64x64xf32> to vector<64x64xbf16>
    %cst_8 = arith.constant dense<0.000000e+00> : vector<64x64xf32>
    %25 = tpu.matmul %23, %24, %cst_8 {dimension_numbers = #tpu.dot_dimension_numbers<[0], [0], [1], [1], [0, 1, 1, 1], [], []>} : vector<64x64xbf16>, vector<64x64xbf16>, vector<64x64xf32> -> vector<64x64xf32>
    %c0_9 = arith.constant 0 : index
    %c0_10 = arith.constant 0 : index
    %26 = vector.load %arg5[%c0_9, %c0_10] : memref<64x64xf32, #tpu.memory_space<vmem>>, vector<64x64xf32>
    %27 = arith.mulf %25, %26 : vector<64x64xf32>
    %c0_11 = arith.constant 0 : index
    %c0_12 = arith.constant 0 : index
    %28 = vector.load %arg6[%c0_11, %c0_12] : memref<64x64xf32, #tpu.memory_space<vmem>>, vector<64x64xf32>
    %29 = arith.addf %27, %28 : vector<64x64xf32>
    %cst_13 = arith.constant dense<0xFF800000> : vector<64xf32>
    %30 = vector.multi_reduction <maximumf>, %29, %cst_13 [1] : vector<64x64xf32> to vector<64xf32>
    %31 = vector.shape_cast %30 : vector<64xf32> to vector<64x1xf32>
    %32 = vector.broadcast %31 : vector<64x1xf32> to vector<64x64xf32>
    %33 = arith.subf %29, %32 : vector<64x64xf32>
    %34 = math.exp %33 : vector<64x64xf32>
    %cst_14 = arith.constant dense<0.000000e+00> : vector<64xf32>
    %35 = vector.multi_reduction <add>, %34, %cst_14 [1] : vector<64x64xf32> to vector<64xf32>
    %36 = vector.shape_cast %35 : vector<64xf32> to vector<64x1xf32>
    %37 = tpu.reciprocal %36 {approx = true} : vector<64x1xf32> -> vector<64x1xf32>
    %38 = vector.broadcast %37 : vector<64x1xf32> to vector<64x64xf32>
    %39 = arith.mulf %34, %38 : vector<64x64xf32>
    %40 = arith.truncf %6 : vector<64x64xf32> to vector<64x64xbf16>
    %41 = arith.truncf %39 : vector<64x64xf32> to vector<64x64xbf16>
    %cst_15 = arith.constant dense<0.000000e+00> : vector<64x64xf32>
    %42 = tpu.matmul %40, %41, %cst_15 {dimension_numbers = #tpu.dot_dimension_numbers<[1], [1], [0], [0], [0, 0, 1, 0], [], []>} : vector<64x64xbf16>, vector<64x64xbf16>, vector<64x64xf32> -> vector<64x64xf32>
    %43 = arith.truncf %42 : vector<64x64xf32> to vector<64x64xbf16>
    %c0_16 = arith.constant 0 : index
    %c0_17 = arith.constant 0 : index
    %44 = vector.load %arg3[%c0_16, %c0_17] : memref<64x64xbf16, #tpu.memory_space<vmem>>, vector<64x64xbf16>
    %cst_18 = arith.constant dense<0.000000e+00> : vector<64x64xf32>
    %45 = tpu.matmul %43, %44, %cst_18 {dimension_numbers = #tpu.dot_dimension_numbers<[1], [0], [0], [1], [0, 0, 1, 1], [], []>} : vector<64x64xbf16>, vector<64x64xbf16>, vector<64x64xf32> -> vector<64x64xf32>
    %c0_19 = arith.constant 0 : index
    %c0_20 = arith.constant 0 : index
    %46 = vector.load %arg4[%c0_19, %c0_20] : memref<1x64xf32, #tpu.memory_space<vmem>>, vector<1x64xf32>
    %47 = vector.broadcast %46 : vector<1x64xf32> to vector<64x64xf32>
    %48 = arith.addf %45, %47 : vector<64x64xf32>
    %c0_21 = arith.constant 0 : index
    %c0_22 = arith.constant 0 : index
    %c0_23 = arith.constant 0 : index
    %49 = vector.load %arg7[%c0_21, %c0_22, %c0_23] : memref<1x64x64xf32, #tpu.memory_space<vmem>>, vector<1x64x64xf32>
    %50 = vector.shape_cast %49 : vector<1x64x64xf32> to vector<64x64xf32>
    %51 = vector.shape_cast %48 : vector<64x64xf32> to vector<1x64x64xf32>
    tpu.vector_store %arg7[%c0_21, %c0_22, %c0_23], %51 {strides = array<i32>} : memref<1x64x64xf32, #tpu.memory_space<vmem>>, vector<1x64x64xf32>,
    return
  }
  func.func @transform_0(%arg0: i32) -> (i32, i32, i32) {
    %c0_i32 = arith.constant 0 : i32
    %c0_i32_0 = arith.constant 0 : i32
    %c0_i32_1 = arith.constant 0 : i32
    return %arg0, %c0_i32, %c0_i32_0 : i32, i32, i32
  }
  func.func @transform_1(%arg0: i32) -> (i32, i32) {
    %c0_i32 = arith.constant 0 : i32
    %c0_i32_0 = arith.constant 0 : i32
    %c0_i32_1 = arith.constant 0 : i32
    return %c0_i32, %c0_i32_0 : i32, i32
  }
  func.func @transform_2(%arg0: i32) -> (i32, i32) {
    %c0_i32 = arith.constant 0 : i32
    %c0_i32_0 = arith.constant 0 : i32
    %c0_i32_1 = arith.constant 0 : i32
    return %c0_i32, %c0_i32_0 : i32, i32
  }
  func.func @transform_3(%arg0: i32) -> (i32, i32) {
    %c0_i32 = arith.constant 0 : i32
    %c0_i32_0 = arith.constant 0 : i32
    %c0_i32_1 = arith.constant 0 : i32
    return %c0_i32, %c0_i32_0 : i32, i32
  }
  func.func @transform_4(%arg0: i32) -> (i32, i32) {
    %c0_i32 = arith.constant 0 : i32
    %c0_i32_0 = arith.constant 0 : i32
    %c0_i32_1 = arith.constant 0 : i32
    return %c0_i32, %c0_i32_0 : i32, i32
  }
  func.func @transform_5(%arg0: i32) -> (i32, i32) {
    %c0_i32 = arith.constant 0 : i32
    %c0_i32_0 = arith.constant 0 : i32
    %c0_i32_1 = arith.constant 0 : i32
    return %c0_i32, %c0_i32_0 : i32, i32
  }
  func.func @transform_6(%arg0: i32) -> (i32, i32, i32) {
    %c0_i32 = arith.constant 0 : i32
    %c0_i32_0 = arith.constant 0 : i32
    %c0_i32_1 = arith.constant 0 : i32
    return %arg0, %c0_i32, %c0_i32_0 : i32, i32, i32
  }
}

</mosaic_0001>

<bundles_post_ra>
// kernel: xca_forward.1
= control target key start
LH: loop header
LB: loop body
LE: loop exit
PB: predicated region body
PF: predicated region fallthrough
CT: control target
= control target key end

     0   :  { %11 = vsyncpa [#allocation3], 0  ;;  %s1693_s0 = inlined_call_operand.vmem [shape: bf16[2,64,64], index: 0, kind: input, shape index: {}]   ;;  %s1694_s1 = inlined_call_operand.vmem [shape: bf16[64,192], index: 1, kind: input, shape index: {}]   ;;  %s1695_s2 = inlined_call_operand.vmem [shape: bf16[64,64], index: 2, kind: input, shape index: {}]   ;;  %s1696_s3 = inlined_call_operand.vmem [shape: f32[1,64], index: 3, kind: input, shape index: {}]   ;;  %s1697_s4 = inlined_call_operand.vmem [shape: f32[64,64], index: 4, kind: input, shape index: {}]   ;;  %s1698_s5 = inlined_call_operand.vmem [shape: f32[64,64], index: 5, kind: input, shape index: {}]   ;;  %s1699_s6 = inlined_call_operand.hbm [shape: f32[2,64,64], index: 6, kind: output, shape index: {}]  }
   0x1   :  { %13 = vsyncpa [#allocation3 + $0x1], 0  ;;  %s1366_s21 = smov 0   ;;  %s1368_s22 = smov 0  }
   0x2   :  { %s1370_s23 = smov 0   ;;  %s1372_s24 = smov 0  }
   0x3 LB: > { %s1387_s25 = sadd.s32 4294967295, %s1324_s24   ;;  %s1036_s26 = sadd.s32 4294967294, %s1324_s24   ;;  %s1324_s24 = sphi %s1372_s24, %s1705_s24   ;;  %s1320_s23 = sphi %s1370_s23, %s1704_s23   ;;  %s1316_s22 = sphi %s1368_s22, %s1703_s22   ;;  %s1312_s21 = sphi %s1366_s21, %s1702_s21  }
   0x4   : > { %s1391_s27 = sadd.s32 1, %s1324_s24   ;;  %s157_s28 = sadd.s32 1, %s1320_s23 }
   0x5   : > { %s154_s29 = ssub.s32 %s1324_s24, %s1391_s27  ;;  %p167_p0 = scmp.ne.s32.totalorder %s1320_s23, %s1316_s22 }
   0x6   : > { %p155_p1 = scmp.eq.s32.totalorder %s154_s29, 0  ;;  %p168_p2 = scmp.eq.s32.totalorder %s1387_s25, 1 }
   0x7   : > { %p173_p3 = scmp.ne.s32.totalorder %s1316_s22, %s1312_s21  ;;  %p174_p4 = scmp.eq.s32.totalorder %s1036_s26, 1 }
   0x8   : > { %s1402_s30 = scalar_select %p155_p1, %s1320_s23, %s157_s28  }
   0x9   : > { %p1404_p5 = por %p168_p2, %p167_p0  ;;  %p1408_p6 = por %p174_p4, %p173_p3 }
   0xa   : > { %p1039_p7 = scmp.ge.s32.totalorder %s1324_s24, 1  ;;  %p215_p8 = scmp.lt.s32.totalorder %s1324_s24, 3 }
   0xc   : > { %p216_p9 = pnand %p1039_p7, %p215_p8 }
   0xd   : > { %v1202_v0 = vld [vmem:[%s1694_s1 + $0x4] ss:$8 sps:$4 sm:$0xff] (!%p216_p9)   ;;  %p245_p10 = scmp.lt.s32.totalorder (!%p216_p9), %s1387_s25, 1  ;;  %v1204_v1 = vld [vmem:[%s1694_s1] ss:$8 sps:$4 sm:$0xff] (!%p216_p9)   ;;  %v1326_v2 = vmov (!%p216_p9), 0  }
   0xe   : > { %219 = sbr.rel (%p216_p9) target bundleno = 1487 (0x5cf), region = 44  ;;  %372 = vmatprep.mubr.bf16.mxu0 (!%p216_p9), %v1326_v2  ;;  %340 = vmatprep.subr.bf16.mxu0 (!%p216_p9), %v1202_v0  ;;  %v1205_v3 = vld [vmem:[%s1694_s1 + $0x14] ss:$8 sps:$4 sm:$0xff] (!%p216_p9)   ;;  %v1207_v4 = vld [vmem:[%s1694_s1 + $0x10] ss:$8 sps:$4 sm:$0xff] (!%p216_p9)   ;;  %vm327_vm0 = vcmask (!%p216_p9), 523264  }
   0xf   : > { %341 = vmatpush1.bf16.msra.mxu0 (!%p216_p9), %v1204_v1  ;;  %v1208_v5 = vld [vmem:[%s1694_s1 + $0x24] ss:$8 sps:$4 sm:$0xff] (!%p216_p9)   ;;  %v1210_v6 = vld [vmem:[%s1694_s1 + $0x20] ss:$8 sps:$4 sm:$0xff] (!%p216_p9)   ;;  %v1211_v7 = vld [vmem:[%s1694_s1 + $0x34] ss:$8 sps:$4 sm:$0xff] (!%p216_p9)  }
  0x10   : > { %342 = vmatprep.subr.bf16.mxu0 (!%p216_p9), %v1205_v3  ;;  %v1213_v8 = vld [vmem:[%s1694_s1 + $0x30] ss:$8 sps:$4 sm:$0xff] (!%p216_p9)   ;;  %vm459_vm1 = vcmask (!%p216_p9), 1048064   ;;  %s242_s11 = sand.u32 (!%p216_p9), 1, %s1316_s22   ;;  %s1082_s16 = sshll.u32 (!%p216_p9), %s1387_s25, 10 }
  0x11   : > { %s1040_s12 = sshll.u32 (!%p216_p9), %s242_s11, 6  ;;  %s1328_s28 = smov (!%p216_p9), [#allocation2]  }
  0x13   : > { %343 = vmatpush1.bf16.msra.mxu0 (!%p216_p9), %v1207_v4 }
  0x14   : > { %344 = vmatprep.subr.bf16.mxu0 (!%p216_p9), %v1208_v5 }
  0x15   : > { %s246_s15 = scalar_select %p245_p10, %s1387_s25, 1 }
  0x16   : > { %s1652_s25 = scalar_lea.sflag [#allocation3], %s242_s11 }
  0x17   : > { %s1081_s20 = sshll.u32 %s246_s15, 5  ;;  %345 = vmatpush1.bf16.msra.mxu0 %v1210_v6  ;;  %s1327_s15 = smov 64  }
  0x18   : > { %s249_s29 = scalar_lea.vmem %s1693_s0, %s1081_s20  ;;  %346 = vmatprep.subr.bf16.mxu0 %v1211_v7  ;;  %s1643_s20 = scalar_lea.hbm %s1699_s6, %s1082_s16 }
  0x19   : > { %v1214_v9 = vld [vmem:[%s249_s29] sm:$0xff]   ;;  %v1215_v10 = vld [vmem:[%s249_s29 + $0x8] sm:$0xff]   ;;  %v1216_v11 = vld [vmem:[%s249_s29 + $0x10] sm:$0xff]  }
  0x1a   : > { %v1217_v12 = vld [vmem:[%s249_s29 + $0x18] sm:$0xff]   ;;  %s1266_s29 = sshll.u32 %s1328_s28, 4  ;;  %s1267_s29 = int_to_ptr.vmem [resolvable:$false] %s1266_s29 }
  0x1b   : > { %347 = vmatpush1.bf16.msra.mxu0 %v1213_v8  ;;  %s1268_s9 = scalar_lea.vmem %s1267_s29, 2048 }
  0x1e   : > { %1055 = vmatmul.mubr.msk.bf16.vlgmr.msra.gmra.mrb[0].mxu0 %vm327_vm0, %v1214_v9 }
  0x1f   : > { %382 = vmatprep.mubr.bf16.mxu0 %v1326_v2 }
  0x26   : > { %1056 = vmatmul.mubr.msk.bf16.gmra.mrb[4].mxu0 %vm327_vm0, %v1215_v10 }
  0x27   : > { %392 = vmatprep.mubr.bf16.mxu0 %v1326_v2 }
  0x2e   : > { %1057 = vmatmul.mubr.msk.bf16.gmra.mrb[8].mxu0 %vm327_vm0, %v1216_v11 }
  0x2f   : > { %402 = vmatprep.mubr.bf16.mxu0 %v1326_v2 }
  0x36   : > { %1058 = vmatmul.mubr.msk.bf16.gmra.mrb[12].mxu0 %vm327_vm0, %v1217_v12 }
  0xf1   : > { %v1447_v13 = vpop.f32.mrb[0].mxu0 }
  0xf2   : > { %v413_v14 = vmul.f32 %v1447_v13, %v1447_v13  ;;  %v376_v15 = vpop.f32.mrb[1].mxu0 }
  0xf3   : > { %v1451_v16 = vpop.f32.mrb[2].mxu0 }
  0xf4   : > { %v414_v17 = vmul.f32 %v1451_v16, %v1451_v16  ;;  %v380_v18 = vpop.f32.mrb[3].mxu0  ;;  %v421_v20 = vsel %vm327_vm0, %v413_v14, 0.0  ;;  %v460_v21 = vsel %vm459_vm1, %v413_v14, 0.0 }
  0xf5   : > { %v735_v19 = vpack.c.bf16 %v380_v18, %v376_v15 }
  0xf6   : > { %v422_v22 = vsel %vm327_vm0, %v414_v17, 0.0  ;;  %v461_v23 = vsel %vm459_vm1, %v414_v17, 0.0 }
  0xf7   : > { %v423_v24 = vadd.f32 %v422_v22, %v421_v20  ;;  %v462_v25 = vadd.f32 %v461_v23, %v460_v21  ;;  %1131 = vmatprep.mubr.msk.bf16.mxu0 %vm327_vm0, %v735_v19 }
  0xf9   : > { %v1460_v26 = vpop.f32.mrb[4].mxu0 }
  0xfa   : > { %v415_v27 = vmul.f32 %v1460_v26, %v1460_v26  ;;  %v1464_v28 = vpop.f32.mrb[5].mxu0 }
  0xfb   : > { %v1466_v29 = vpop.f32.mrb[6].mxu0 }
  0xfc   : > { %v424_v30 = vsel %vm327_vm0, %v415_v27, 0.0  ;;  %v463_v31 = vsel %vm459_vm1, %v415_v27, 0.0  ;;  %v416_v32 = vmul.f32 %v1466_v29, %v1466_v29  ;;  %v1472_v33 = vpop.f32.mrb[7].mxu0 }
  0xfd   : > { %v425_v34 = vadd.f32 %v424_v30, %v423_v24  ;;  %v464_v35 = vadd.f32 %v463_v31, %v462_v25  ;;  %v736_v36 = vpack.c.bf16 %v1472_v33, %v1464_v28 }
  0xfe   : > { %v426_v37 = vsel %vm327_vm0, %v416_v32, 0.0  ;;  %v465_v38 = vsel %vm459_vm1, %v416_v32, 0.0 }
  0xff   : > { %v427_v39 = vadd.f32 %v426_v37, %v425_v34  ;;  %v466_v40 = vadd.f32 %v465_v38, %v464_v35 }
 0x101   : > { %v1478_v41 = vpop.f32.mrb[8].mxu0 }
 0x102   : > { %v417_v42 = vmul.f32 %v1478_v41, %v1478_v41  ;;  %v1482_v43 = vpop.f32.mrb[9].mxu0 }
 0x103   : > { %v1484_v44 = vpop.f32.mrb[10].mxu0 }
 0x104   : > { %v428_v45 = vsel %vm327_vm0, %v417_v42, 0.0  ;;  %v467_v46 = vsel %vm459_vm1, %v417_v42, 0.0  ;;  %v418_v47 = vmul.f32 %v1484_v44, %v1484_v44  ;;  %v1490_v48 = vpop.f32.mrb[11].mxu0 }
 0x105   : > { %v429_v49 = vadd.f32 %v428_v45, %v427_v39  ;;  %v468_v50 = vadd.f32 %v467_v46, %v466_v40  ;;  %v737_v51 = vpack.c.bf16 %v1490_v48, %v1482_v43 }
 0x106   : > { %v430_v52 = vsel %vm327_vm0, %v418_v47, 0.0  ;;  %v469_v53 = vsel %vm459_vm1, %v418_v47, 0.0 }
 0x107   : > { %v431_v54 = vadd.f32 %v430_v52, %v429_v49  ;;  %v470_v55 = vadd.f32 %v469_v53, %v468_v50 }
 0x109   : > { %v1496_v56 = vpop.f32.mrb[12].mxu0 }
 0x10a   : > { %v419_v57 = vmul.f32 %v1496_v56, %v1496_v56  ;;  %v1500_v58 = vpop.f32.mrb[13].mxu0 }
 0x10b   : > { %v408_v59 = vpop.f32.mrb[14].mxu0 }
 0x10c   : > { %v432_v60 = vsel %vm327_vm0, %v419_v57, 0.0  ;;  %v471_v61 = vsel %vm459_vm1, %v419_v57, 0.0  ;;  %v420_v62 = vmul.f32 %v408_v59, %v408_v59  ;;  %v1504_v63 = vpop.f32.mrb[15].mxu0 }
 0x10d   : > { %v433_v0 = vadd.f32 %v432_v60, %v431_v54  ;;  %v472_v1 = vadd.f32 %v471_v61, %v470_v55  ;;  %v738_v2 = vpack.c.bf16 %v1504_v63, %v1500_v58 }
 0x10e   : > { %v434_v3 = vsel %vm327_vm0, %v420_v62, 0.0  ;;  %v473_v4 = vsel %vm459_vm1, %v420_v62, 0.0 }
 0x10f   : > { %v435_v5 = vadd.f32 %v434_v3, %v433_v0  ;;  %v474_v6 = vadd.f32 %v473_v4, %v472_v1 }
 0x111   : > { %v436_v7 = vrot.slane %v435_v5, 4  ;;  %v475_v8 = vrot.slane %v474_v6, 4 }
 0x113   : > { %v437_v9 = vadd.f32 %v436_v7, %v435_v5  ;;  %v476_v10 = vadd.f32 %v475_v8, %v474_v6 }
 0x115   : > { %v438_v11 = vrot.slane %v437_v9, 2  ;;  %v477_v12 = vrot.slane %v476_v10, 2 }
 0x117   : > { %v439_v14 = vadd.f32 %v438_v11, %v437_v9  ;;  %v478_v15 = vadd.f32 %v477_v12, %v476_v10  ;;  %v615_v10 = vld [vmem:[%s1697_s4] sm:$0xff]  ;;  %v618_v12 = vld [vmem:[%s1697_s4 + $0x18] sm:$0xff] }
 0x119   : > { %v440_v17 = vrot.slane %v439_v14, 1  ;;  %v479_v18 = vrot.slane %v478_v15, 1 }
 0x11b   : > { %v441_v19 = vadd.f32 %v440_v17, %v439_v14  ;;  %v480_v20 = vadd.f32 %v479_v18, %v478_v15  ;;  %v616_v15 = vld [vmem:[%s1697_s4 + $0x8] sm:$0xff]  ;;  %v631_v17 = vld [vmem:[%s1698_s5] sm:$0xff] }
 0x11d   : > { %1222 = vrsqrt.f32 %v441_v19  ;;  %vm444_vm2 = vcmp.eq.f32.partialorder %v441_v19, inf  ;;  %v447_v24 = vand.u32 2147483648, %v441_v19  ;;  %vm446_vm3 = vcmp.eq.f32.partialorder %v441_v19, 0.0 }
 0x11e   : > { %1224 = vrsqrt.f32 %v480_v20  ;;  %vm483_vm4 = vcmp.eq.f32.partialorder %v480_v20, inf  ;;  %v486_v30 = vand.u32 2147483648, %v480_v20  ;;  %vm485_vm5 = vcmp.eq.f32.partialorder %v480_v20, 0.0 }
 0x127   : > { %v1223_v21 = vpop.eup %1222 }
 0x128   : > { %v1225_v22 = vpop.eup %1224  ;;  %v443_v23 = vmul.f32 %v1223_v21, %v441_v19  ;;  %v617_v21 = vld [vmem:[%s1697_s4 + $0x10] sm:$0xff] }
 0x129   : > { %v482_v25 = vmul.f32 %v1225_v22, %v480_v20 }
 0x12a   : > { %v445_v27 = vsel %vm444_vm2, %v441_v19, %v443_v23 }
 0x12b   : > { %v448_v31 = vsel %vm446_vm3, %v447_v24, %v445_v27  ;;  %v484_v32 = vsel %vm483_vm4, %v480_v20, %v482_v25  ;;  %v634_v20 = vld [vmem:[%s1698_s5 + $0x18] sm:$0xff]  ;;  %v632_v24 = vld [vmem:[%s1698_s5 + $0x8] sm:$0xff] }
 0x12c   : > { %v449_v34 = vmax.f32 %v448_v31, 1e-12  ;;  %v487_v35 = vsel %vm485_vm5, %v486_v30, %v484_v32 }
 0x12d   : > { %v488_v37 = vmax.f32 %v487_v35, 1e-12 }
 0x12e   : > { %1226 = vrcp.f32 %v449_v34 }
 0x12f   : > { %1228 = vrcp.f32 %v488_v37  ;;  %v619_v37 = vld [vmem:[%s1697_s4 + $0x20] sm:$0xff] }
 0x138   : > { %v1227_v38 = vpop.eup %1226 }
 0x139   : > { %v1229_v39 = vpop.eup %1228  ;;  %v458_v40 = vmul.f32 %v1227_v38, %v408_v59  ;;  %v451_v42 = vmul.f32 %v1227_v38, %v1447_v13  ;;  %v452_v45 = vmul.f32 %v1227_v38, %v1451_v16  ;;  %v453_v46 = vmul.f32 %v1227_v38, %v1460_v26 }
 0x13a   : > { %v497_v47 = vmul.f32 %v1229_v39, %v408_v59  ;;  %v494_v49 = vmul.f32 %v1229_v39, %v1478_v41  ;;  %v495_v50 = vmul.f32 %v1229_v39, %v1484_v44  ;;  %v490_v52 = vmul.f32 %v1229_v39, %v1447_v13 }
 0x13b   : > { %v491_v53 = vmul.f32 %v1229_v39, %v1451_v16  ;;  %v496_v54 = vmul.f32 %v1229_v39, %v1496_v56  ;;  %v492_v55 = vmul.f32 %v1229_v39, %v1460_v26  ;;  %v493_v57 = vmul.f32 %v1229_v39, %v1466_v29 }
 0x13c   : > { %v504_v60 = vpack.c.bf16 %v495_v50, %v494_v49  ;;  %v498_v61 = vpack.c.bf16 %v452_v45, %v451_v42  ;;  %v454_v62 = vmul.f32 %v1227_v38, %v1466_v29  ;;  %v455_v59 = vmul.f32 %v1227_v38, %v1478_v41  ;;  %v620_v45 = vld [vmem:[%s1697_s4 + $0x28] sm:$0xff] }
 0x13d   : > { %v502_v0 = vpack.c.bf16 %v491_v53, %v490_v52  ;;  %v505_v1 = vpack.c.bf16 %v497_v47, %v496_v54  ;;  %v503_v3 = vpack.c.bf16 %v493_v57, %v492_v55  ;;  %v456_v4 = vmul.f32 %v1227_v38, %v1484_v44  ;;  %v638_v53 = vld [vmem:[%s1698_s5 + $0x38] sm:$0xff] }
 0x13e   : > { %530 = vrot.lane.b32.xlu1 %v504_v60, %s1327_s15  ;;  %v499_v13 = vpack.c.bf16 %v454_v62, %v453_v46  ;;  %v457_v16 = vmul.f32 %v1227_v38, %v1496_v56  ;;  %v633_v38 = vld [vmem:[%s1698_s5 + $0x10] sm:$0xff]  ;;  %v635_v46 = vld [vmem:[%s1698_s5 + $0x20] sm:$0xff]  ;;  %v636_v62 = vld [vmem:[%s1698_s5 + $0x28] sm:$0xff] }
 0x13f   : > { %526 = vrot.lane.b32.xlu0 %v502_v0, %s1327_s15  ;;  %v500_v26 = vpack.c.bf16 %v456_v4, %v455_v59  ;;  %v621_v0 = vld [vmem:[%s1697_s4 + $0x30] sm:$0xff] }
 0x140   : > { %v501_v5 = vpack.c.bf16 %v458_v40, %v457_v16  ;;  %v622_v40 = vld [vmem:[%s1697_s4 + $0x38] sm:$0xff]  ;;  %v637_v16 = vld [vmem:[%s1698_s5 + $0x30] sm:$0xff] }
 0x142   : > { %532 = vrot.lane.b32.xlu1 %v505_v1, %s1327_s15 }
 0x143   : > { %528 = vrot.lane.b32.xlu0 %v503_v3, %s1327_s15  ;;  %s244_s15 = scalar_lea.vmem [#allocation2], %s1040_s12 }
 0x144   : > { %s974_s17 = sshll.u32 %s244_s15, 4  ;;  %s1645_s17 = int_to_ptr.vmem [resolvable:$true] %s974_s17 }
 0x145   : > { %s1262_s26 = scalar_lea.vmem %s1645_s17, 1024  ;;  %p1269_p0 = scmp.lt.s32.totalorder %s1645_s17, %s1267_s29 }
 0x146   : > { %p1263_p11 = scmp.ne.s32.totalorder %s1645_s17, %s1262_s26  ;;  %p1270_p1 = scmp.lt.s32.totalorder %s1268_s9, %s1262_s26 }
 0x148   : > { %p1264_p12 = pnand %p1263_p11, %p1404_p5  ;;  %p1271_p2 = por %p1270_p1, %p1269_p0 }
 0x14a   : > { %p1265_p13 = pneg %p1264_p12 }
 0x14c   : > { %p1272_p3 = pnand %p1271_p2, %p1265_p13 }
 0x161   : > { %506 = vxpose.xlu0.c.b16.start [1/4] (short) (narrow) %v498_v61, 64 }
 0x165   : > { %507 = vxpose.xlu0.c.b16.cont [2/4] (short) (narrow) %v499_v13, 64 }
 0x169   : > { %508 = vxpose.xlu0.c.b16.cont [3/4] (short) (narrow) %v500_v26, 64 }
 0x16d   : > { %509 = vxpose.xlu0.c.b16.end [4/4] (short) (narrow) %v501_v5, 64 }
 0x1b0   : > { %v531_v41 = vpop.permute.xlu1 %530 }
 0x1b1   : > { %v527_v29 = vpop.permute.xlu0 %526 }
 0x1b2   : > { %1107 = vmatprep.subr.bf16.mxu1 %v527_v29 }
 0x1b3   : > { %1108 = vmatpush3.bf16.msra.mxu1 %v527_v29 }
 0x1b4   : > { %v533_v44 = vpop.permute.xlu1 %532 }
 0x1b5   : > { %v529_v6 = vpop.permute.xlu0 %528 }
 0x1b6   : > { %1109 = vmatprep.subr.bf16.mxu1 %v529_v6 }
 0x1b7   : > { %1110 = vmatpush3.bf16.msra.mxu1 %v529_v6 }
 0x1b8   : > { %1111 = vmatprep.subr.bf16.mxu1 %v531_v41 }
 0x1bb   : > { %1112 = vmatpush3.bf16.msra.mxu1 %v531_v41 }
 0x1bc   : > { %1113 = vmatprep.subr.bf16.mxu1 %v533_v44 }
 0x1bf   : > { %1114 = vmatpush3.bf16.msra.mxu1 %v533_v44 }
 0x1c7   : > { %v514_v56 = vpop.trf.xlu0 }
 0x1c8   : > { %1115 = vmatprep.mubr.msk.bf16.mxu1 %vm327_vm0, %v514_v56 }
 0x1cb   : > { %v515_v7 = vpop.trf.xlu0 }
 0x1cc   : > { %1116 = vmatmul.mubr.msk.bf16.vlgmr.msra.gmra.mrb[0].mxu1 %vm327_vm0, %v515_v7 }
 0x1cf   : > { %v516_v8 = vpop.trf.xlu0 }
 0x1d0   : > { %1119 = vmatprep.mubr.msk.bf16.mxu1 %vm327_vm0, %v516_v8 }
 0x1d3   : > { %v517_v9 = vpop.trf.xlu0 }
 0x1d4   : > { %1120 = vmatmul.mubr.msk.bf16.gmra.mrb[4].mxu1 %vm327_vm0, %v517_v9 }
 0x29f   : > { %v1117_v11 = vpop.f32.mrb[0].mxu1 }
 0x2a0   : > { %v584_v14 = vpop.f32.mrb[1].mxu1  ;;  %v625_v31 = vmul.f32 %v1117_v11, %v617_v21 }
 0x2a1   : > { %v623_v18 = vmul.f32 %v615_v10, %v584_v14  ;;  %v1118_v19 = vpop.f32.mrb[2].mxu1 }
 0x2a2   : > { %v626_v22 = vmul.f32 %v1118_v19, %v618_v12  ;;  %v587_v23 = vpop.f32.mrb[3].mxu1  ;;  %v641_v52 = vadd.f32 %v633_v38, %v625_v31 }
 0x2a3   : > { %v624_v25 = vmul.f32 %v616_v15, %v587_v23  ;;  %v639_v27 = vadd.f32 %v631_v17, %v623_v18 }
 0x2a4   : > { %v642_v30 = vadd.f32 %v634_v20, %v626_v22  ;;  %v653_v59 = vsel %vm327_vm0, %v641_v52, -inf }
 0x2a5   : > { %v647_v32 = vsel %vm327_vm0, %v639_v27, -inf  ;;  %v640_v34 = vadd.f32 %v632_v24, %v624_v25 }
 0x2a6   : > { %648 = vmax.xlane.f32.xlu1 %v647_v32  ;;  %v656_v35 = vsel %vm327_vm0, %v642_v30, -inf }
 0x2a7   : > { %657 = vmax.xlane.f32.xlu0 %v656_v35  ;;  %v1121_v39 = vpop.f32.mrb[4].mxu1  ;;  %v650_v50 = vsel %vm327_vm0, %v640_v34, -inf }
 0x2a8   : > { %v600_v42 = vpop.f32.mrb[5].mxu1  ;;  %v629_v13 = vmul.f32 %v1121_v39, %v621_v0 }
 0x2a9   : > { %v627_v47 = vmul.f32 %v619_v37, %v600_v42  ;;  %v1122_v49 = vpop.f32.mrb[6].mxu1 }
 0x2aa   : > { %v630_v54 = vmul.f32 %v1122_v49, %v622_v40  ;;  %651 = vmax.xlane.f32.xlu1 %v650_v50  ;;  %v603_v55 = vpop.f32.mrb[7].mxu1  ;;  %v645_v5 = vadd.f32 %v637_v16, %v629_v13 }
 0x2ab   : > { %v628_v57 = vmul.f32 %v620_v45, %v603_v55  ;;  %v643_v60 = vadd.f32 %v635_v46, %v627_v47  ;;  %v1218_v55 = vld [vmem:[%s1695_s2] sm:$0xff]  }
 0x2ac   : > { %v646_v61 = vadd.f32 %v638_v53, %v630_v54  ;;  %v665_v29 = vsel %vm327_vm0, %v645_v5, -inf  ;;  %1139 = vmatprep.subr.bf16.mxu1 %v1218_v55 }
 0x2ad   : > { %v659_v3 = vsel %vm327_vm0, %v643_v60, -inf  ;;  %v644_v4 = vadd.f32 %v636_v62, %v628_v57  ;;  %v1219_v57 = vld [vmem:[%s1695_s2 + $0x8] sm:$0xff]   ;;  %1140 = vmatpush3.bf16.msra.mxu1 %v1218_v55 }
 0x2ae   : > { %654 = vmax.xlane.f32.xlu1 %v653_v59  ;;  %v668_v1 = vsel %vm327_vm0, %v646_v61, -inf  ;;  %1141 = vmatprep.subr.bf16.mxu1 %v1219_v57 }
 0x2af   : > { %669 = vmax.xlane.f32.xlu0 %v668_v1  ;;  %v662_v26 = vsel %vm327_vm0, %v644_v4, -inf }
 0x2b1   : > { %1142 = vmatpush3.bf16.msra.mxu1 %v1219_v57 }
 0x2b2   : > { %660 = vmax.xlane.f32.xlu1 %v659_v3 }
 0x2b6   : > { %663 = vmax.xlane.f32.xlu1 %v662_v26 }
 0x2ba   : > { %666 = vmax.xlane.f32.xlu1 %v665_v29 }
 0x333   : > { %v649_v41 = vpop.xlane.xlu1 %648 }
 0x334   : > { %v671_v6 = vsub.f32 %v639_v27, %v649_v41  ;;  %v658_v44 = vpop.xlane.xlu0 %657 }
 0x335   : > { %v674_v7 = vsub.f32 %v642_v30, %v658_v44 }
 0x336   : > { %v679_v56 = vmul.f32 1.442695, %v671_v6 }
 0x337   : > { %v652_v8 = vpop.xlane.xlu1 %651  ;;  %v685_v10 = vmul.f32 1.442695, %v674_v7 }
 0x338   : > { %1230 = vpow2.f32 %v679_v56  ;;  %v672_v9 = vsub.f32 %v640_v34, %v652_v8 }
 0x33a   : > { %v681_v11 = vmul.f32 1.442695, %v672_v9 }
 0x33b   : > { %v655_v12 = vpop.xlane.xlu1 %654 }
 0x33c   : > { %1232 = vpow2.f32 %v681_v11  ;;  %v673_v14 = vsub.f32 %v641_v52, %v655_v12  ;;  %v670_v17 = vpop.xlane.xlu0 %669 }
 0x33d   : > { %1234 = vpow2.f32 %v685_v10  ;;  %v678_v21 = vsub.f32 %v646_v61, %v670_v17 }
 0x33e   : > { %v683_v15 = vmul.f32 1.442695, %v673_v14 }
 0x33f   : > { %v661_v18 = vpop.xlane.xlu1 %660  ;;  %v693_v30 = vmul.f32 1.442695, %v678_v21 }
 0x340   : > { %1236 = vpow2.f32 %v683_v15  ;;  %v675_v19 = vsub.f32 %v643_v60, %v661_v18  ;;  %v1220_v60 = vld [vmem:[%s1695_s2 + $0x10] sm:$0xff]  }
 0x341   : > { %1143 = vmatprep.subr.bf16.mxu1 %v1220_v60 }
 0x342   : > { %v1231_v20 = vpop.eup %1230  ;;  %v687_v22 = vmul.f32 1.442695, %v675_v19  ;;  %1144 = vmatpush3.bf16.msra.mxu1 %v1220_v60 }
 0x343   : > { %v664_v23 = vpop.xlane.xlu1 %663  ;;  %v695_v24 = vsel %vm327_vm0, %v1231_v20, 0.0 }
 0x344   : > { %1238 = vpow2.f32 %v687_v22  ;;  %v676_v25 = vsub.f32 %v644_v4, %v664_v23  ;;  %696 = vadd.xlane.f32.xlu1 %v695_v24 }
 0x346   : > { %v1233_v27 = vpop.eup %1232  ;;  %v689_v31 = vmul.f32 1.442695, %v676_v25  ;;  %v1221_v25 = vld [vmem:[%s1695_s2 + $0x18] sm:$0xff]  }
 0x347   : > { %v667_v32 = vpop.xlane.xlu1 %666  ;;  %v698_v34 = vsel %vm327_vm0, %v1233_v27, 0.0  ;;  %v1235_v35 = vpop.eup %1234  ;;  %1145 = vmatprep.subr.bf16.mxu1 %v1221_v25 }
 0x348   : > { %1240 = vpow2.f32 %v689_v31  ;;  %v677_v37 = vsub.f32 %v645_v5, %v667_v32  ;;  %699 = vadd.xlane.f32.xlu0 %v698_v34  ;;  %v704_v42 = vsel %vm327_vm0, %v1235_v35, 0.0  ;;  %1146 = vmatpush3.bf16.msra.mxu1 %v1221_v25  ;;  %v1067_v32 = vld [vmem:[%s1696_s3] ss:$0 sm:$0xff] }
 0x349   : > { %1242 = vpow2.f32 %v693_v30 }
 0x34a   : > { %v1237_v38 = vpop.eup %1236  ;;  %v691_v39 = vmul.f32 1.442695, %v677_v37 }
 0x34b   : > { %v701_v40 = vsel %vm327_vm0, %v1237_v38, 0.0 }
 0x34c   : > { %1244 = vpow2.f32 %v691_v39  ;;  %702 = vadd.xlane.f32.xlu1 %v701_v40  ;;  %705 = vadd.xlane.f32.xlu0 %v704_v42 }
 0x34e   : > { %v1239_v45 = vpop.eup %1238 }
 0x34f   : > { %v707_v46 = vsel %vm327_vm0, %v1239_v45, 0.0 }
 0x350   : > { %708 = vadd.xlane.f32.xlu1 %v707_v46 }
 0x352   : > { %v1241_v47 = vpop.eup %1240 }
 0x353   : > { %v710_v49 = vsel %vm327_vm0, %v1241_v47, 0.0  ;;  %v1243_v50 = vpop.eup %1242 }
 0x354   : > { %711 = vadd.xlane.f32.xlu0 %v710_v49  ;;  %v716_v54 = vsel %vm327_vm0, %v1243_v50, 0.0 }
 0x356   : > { %v1245_v52 = vpop.eup %1244 }
 0x357   : > { %v713_v53 = vsel %vm327_vm0, %v1245_v52, 0.0 }
 0x358   : > { %714 = vadd.xlane.f32.xlu1 %v713_v53  ;;  %717 = vadd.xlane.f32.xlu0 %v716_v54 }
 0x3d1   : > { %v697_v61 = vpop.xlane.xlu1 %696 }
 0x3d2   : > { %1246 = vrcp.f32 %v697_v61 }
 0x3d5   : > { %v700_v62 = vpop.xlane.xlu0 %699 }
 0x3d6   : > { %1248 = vrcp.f32 %v700_v62 }
 0x3d9   : > { %v703_v59 = vpop.xlane.xlu1 %702  ;;  %v706_v0 = vpop.xlane.xlu0 %705 }
 0x3da   : > { %1250 = vrcp.f32 %v703_v59 }
 0x3db   : > { %1252 = vrcp.f32 %v706_v0 }
 0x3dc   : > { %v1247_v3 = vpop.eup %1246 }
 0x3dd   : > { %v709_v1 = vpop.xlane.xlu1 %708  ;;  %v727_v16 = vmul.f32 %v1247_v3, %v1231_v20 }
 0x3de   : > { %1254 = vrcp.f32 %v709_v1 }
 0x3e0   : > { %v1249_v4 = vpop.eup %1248 }
 0x3e1   : > { %v712_v13 = vpop.xlane.xlu0 %711  ;;  %v728_v26 = vmul.f32 %v1249_v4, %v1233_v27 }
 0x3e2   : > { %1256 = vrcp.f32 %v712_v13 }
 0x3e3   : > { %v739_v5 = vpack.c.bf16 %v728_v26, %v727_v16 }
 0x3e4   : > { %v1251_v29 = vpop.eup %1250 }
 0x3e5   : > { %v1253_v41 = vpop.eup %1252  ;;  %v715_v6 = vpop.xlane.xlu1 %714  ;;  %1155 = vmatprep.subr.msk.bf16.mxu0 %vm327_vm0, %v739_v5  ;;  %v756_v56 = vsel %vm327_vm0, %v739_v5, 0  ;;  %v729_v7 = vmul.f32 %v1251_v29, %v1237_v38 }
 0x3e6   : > { %v718_v44 = vpop.xlane.xlu0 %717  ;;  %1258 = vrcp.f32 %v715_v6  ;;  %1124 = vmatpush3.bf16.xpose.msra.mxu0 %v756_v56  ;;  %v730_v8 = vmul.f32 %v1253_v41, %v1235_v35 }
 0x3e7   : > { %1260 = vrcp.f32 %v718_v44 }
 0x3e8   : > { %v740_v9 = vpack.c.bf16 %v730_v8, %v729_v7  ;;  %v1255_v10 = vpop.eup %1254 }
 0x3e9   : > { %v731_v14 = vmul.f32 %v1255_v10, %v1239_v45 }
 0x3ea   : > { %1156 = vmatprep.subr.msk.bf16.mxu0 %vm327_vm0, %v740_v9  ;;  %v759_v12 = vsel %vm327_vm0, %v740_v9, 0 }
 0x3ec   : > { %v1257_v11 = vpop.eup %1256 }
 0x3ed   : > { %v732_v15 = vmul.f32 %v1257_v11, %v1241_v47 }
 0x3ee   : > { %1126 = vmatpush3.bf16.xpose.msra.mxu0 %v759_v12 }
 0x3ef   : > { %v741_v17 = vpack.c.bf16 %v732_v15, %v731_v14 }
 0x3f0   : > { %v1259_v18 = vpop.eup %1258 }
 0x3f1   : > { %v1261_v19 = vpop.eup %1260  ;;  %1157 = vmatprep.subr.msk.bf16.mxu0 %vm327_vm0, %v741_v17  ;;  %v733_v20 = vmul.f32 %v1259_v18, %v1245_v52  ;;  %v762_v22 = vsel %vm327_vm0, %v741_v17, 0 }
 0x3f2   : > { %v734_v21 = vmul.f32 %v1261_v19, %v1243_v50 }
 0x3f4   : > { %v742_v23 = vpack.c.bf16 %v734_v21, %v733_v20 }
 0x3f6   : > { %1128 = vmatpush3.bf16.xpose.msra.mxu0 %v762_v22  ;;  %v765_v24 = vsel %vm327_vm0, %v742_v23, 0 }
 0x3f7   : > { %1158 = vmatprep.subr.msk.bf16.mxu0 %vm327_vm0, %v742_v23 }
 0x3fe   : > { %1130 = vmatpush3.bf16.xpose.msra.mxu0 %v765_v24 }
 0x405   : > { %1132 = vmatmul.mubr.msk.bf16.vlgmr.msra.gmra.mrb[16].mxu0 %vm327_vm0, %v736_v36 }
 0x406   : > { %1135 = vmatprep.mubr.msk.bf16.mxu0 %vm327_vm0, %v737_v51 }
 0x40d   : > { %1136 = vmatmul.mubr.msk.bf16.gmra.mrb[20].mxu0 %vm327_vm0, %v738_v2 }
 0x4d8   : > { %v1133_v27 = vpop.f32.mrb[16].mxu0 }
 0x4d9   : > { %v801_v28 = vpop.f32.mrb[17].mxu0 }
 0x4da   : > { %v1134_v33 = vpop.f32.mrb[18].mxu0 }
 0x4db   : > { %v833_v36 = vpack.c.bf16 %v1134_v33, %v1133_v27  ;;  %v804_v43 = vpop.f32.mrb[19].mxu0 }
 0x4dc   : > { %v832_v48 = vpack.c.bf16 %v804_v43, %v801_v28 }
 0x4de   : > { %1147 = vmatprep.mubr.msk.bf16.mxu1 %vm327_vm0, %v832_v48 }
 0x4df   : > { %1148 = vmatmul.mubr.msk.bf16.vlgmr.msra.gmra.mrb[8].mxu1 %vm327_vm0, %v833_v36 }
 0x4e0   : > { %v1137_v51 = vpop.f32.mrb[20].mxu0 }
 0x4e1   : > { %v817_v58 = vpop.f32.mrb[21].mxu0 }
 0x4e2   : > { %v1138_v63 = vpop.f32.mrb[22].mxu0 }
 0x4e3   : > { %v835_v2 = vpack.c.bf16 %v1138_v63, %v1137_v51  ;;  %v820_v30 = vpop.f32.mrb[23].mxu0 }
 0x4e4   : > { %v834_v31 = vpack.c.bf16 %v820_v30, %v817_v58 }
 0x4e6   : > { %1151 = vmatprep.mubr.msk.bf16.mxu1 %vm327_vm0, %v834_v31 }
 0x4e7   : > { %1152 = vmatmul.mubr.msk.bf16.gmra.mrb[12].mxu1 %vm327_vm0, %v835_v2 }
 0x5b2   : > { %v1149_v34 = vpop.f32.mrb[8].mxu1 }
 0x5b3   : > { %v930_v35 = vadd.f32 %v1149_v34, %v1067_v32  ;;  %v921_v37 = vpop.f32.mrb[9].mxu1 }
 0x5b4   : > { %v922_v38 = vadd.f32 %v1067_v32, %v921_v37  ;;  %v1150_v39 = vpop.f32.mrb[10].mxu1 }
 0x5b5   : > { %954 = vst.msk [vmem:[%s244_s15 + $0x10] sm:$0xff] %vm327_vm0, %v930_v35  ;;  %v933_v40 = vadd.f32 %v1150_v39, %v1067_v32  ;;  %v924_v42 = vpop.f32.mrb[11].mxu1 }
 0x5b6   : > { %952 = vst.msk [vmem:[%s244_s15] sm:$0xff] %vm327_vm0, %v922_v38  ;;  %v925_v45 = vadd.f32 %v1067_v32, %v924_v42 }
 0x5b7   : > { %955 = vst.msk [vmem:[%s244_s15 + $0x18] sm:$0xff] %vm327_vm0, %v933_v40 }
 0x5b8   : > { %953 = vst.msk [vmem:[%s244_s15 + $0x8] sm:$0xff] %vm327_vm0, %v925_v45 }
 0x5ba   : > { %v1153_v46 = vpop.f32.mrb[12].mxu1 }
 0x5bb   : > { %v946_v47 = vadd.f32 %v1153_v46, %v1067_v32  ;;  %v937_v49 = vpop.f32.mrb[13].mxu1 }
 0x5bc   : > { %v938_v50 = vadd.f32 %v1067_v32, %v937_v49  ;;  %v1154_v52 = vpop.f32.mrb[14].mxu1 }
 0x5bd   : > { %958 = vst.msk [vmem:[%s244_s15 + $0x30] sm:$0xff] %vm327_vm0, %v946_v47  ;;  %v949_v53 = vadd.f32 %v1154_v52, %v1067_v32  ;;  %v940_v54 = vpop.f32.mrb[15].mxu1 }
 0x5be   : > { %956 = vst.msk [vmem:[%s244_s15 + $0x20] sm:$0xff] %vm327_vm0, %v938_v50  ;;  %v941_v55 = vadd.f32 %v1067_v32, %v940_v54 }
 0x5bf   : > { %959 = vst.msk [vmem:[%s244_s15 + $0x38] sm:$0xff] %vm327_vm0, %v949_v53 }
 0x5c0   : > { %957 = vst.msk [vmem:[%s244_s15 + $0x28] sm:$0xff] %vm327_vm0, %v941_v55 }
 0x5c1   : > { %1275 = shalt.err (!%p1272_p3)
}
 0x5c2   : > { %s1276_s10 = scalar_lea.hbm %s1643_s20, 1024  ;;  %s1280_s13 = scalar_lea.hbm %s1699_s6, 2048 }
 0x5c3   : > { %p1277_p4 = scmp.ne.s32.totalorder %s1643_s20, %s1276_s10  ;;  %p1281_p9 = scmp.lt.u32.totalorder %s1643_s20, %s1699_s6 }
 0x5c4   : > { %p1282_p10 = scmp.lt.u32.totalorder %s1280_s13, %s1276_s10  ;;  %p1284_p12 = scmp.lt.u32.totalorder %s1276_s10, %s1643_s20 }
 0x5c5   : > { %p1278_p7 = pnand %p1277_p4, %p1404_p5 }
 0x5c6   : > { %p1283_p11 = por %p1282_p10, %p1281_p9 }
 0x5c7   : > { %p1279_p8 = pneg %p1278_p7 }
 0x5c8   : > { %p1285_p13 = por %p1284_p12, %p1283_p11 }
 0x5ca   : > { %p1286_p0 = pnand %p1285_p13, %p1279_p8 }
 0x5cc   : > { %1289 = shalt.err (!%p1286_p0)
}
 0x5cd   : > { %s1329_s16 = smov 128   ;;  %s1330_s18 = smov 8  }
 0x5ce   : > { %1159 = dma.vmem_to_hbm [thread:$0]  (%p1404_p5), %s1645_s17, 1024, %s1643_s20, %s1652_s25, %s1329_s16, %s1329_s16, %s1330_s18  }
 0x5cf PF: > { %p1165_p1 = scmp.ge.s32.totalorder %s1324_s24, 2  ;;  %s989_s19 = sand.u32 1, %s1312_s21  }
 0x5d0   : > { %s990_s26 = scalar_lea.sflag [#allocation3], %s989_s19 }
 0x5d1   : > { %p1162_p2 = pnand %p1165_p1, %p1408_p6 }
 0x5d3   : > { %1307 = dma.done.wait (!%p1162_p2), %s990_s26, 1024  }
 0x5d4   : > { %1309 = vsyncadd (!%p1162_p2), %s990_s26, 4294966272  ;;  %p16_p3 = scmp.ge.s32.totalorder %s1391_s27, 4   ;;  %s1702_s21 = smov %s1316_s22 }
 0x5d5   : > { %s1703_s22 = smov %s1320_s23  ;;  %s1704_s23 = smov %s1402_s30 }
 0x5d6   : > { %s1705_s24 = smov %s1391_s27  ;;  %18 = sbr.rel (!%p16_p3) target bundleno = 3 (0x3), region = 79 }
 0x5dd   :  { %995 = vsyncpa [#allocation3], 1 }
 0x5de   :  { %997 = vsyncpa [#allocation3 + $0x1], 1 }

</bundles_post_ra>
